<compile_context>
chip_gen: v6e
topology: v6e:2x2x1
jax: 0.10.0
libtpu: 0.0.40
codegen_flags: <defaults>
</compile_context>

<pallas_src>
import jax
import jax.numpy as jnp
from jax.experimental import pallas as pl
from jax.experimental.pallas import tpu as pltpu

INPUT_DIM = 1
OUTPUT_DIM = 1

_LANES = 128                 # vreg lane width
_PALLAS_MIN_BYTES = 1 << 20  # below this, plain JAX (XLA fusion) wins


def _device_kind():
    try:
        return jax.devices()[0].device_kind.lower()
    except Exception:
        return ""


_KIND = _device_kind()
_IS_V7X = ("v7" in _KIND) or ("tpu7" in _KIND)

# Rows of 128 lanes per grid step.  2048x128 f32 = 1 MiB/block (4 MiB with
# in+out double buffering) — safe under every scoped-VMEM default (16 MiB v5e,
# 32 MiB v6e/v7x).  v7x has 3.2 TB/s HBM, so use bigger blocks to amortize the
# fixed per-step cost: 8192x128 f32 = 4 MiB/block -> 16 MiB double-buffered.
_MAX_TILE_ROWS = 8192 if _IS_V7X else 2048


def _affine_kernel(w_ref, b_ref, x_ref, o_ref):
    # w_ref, b_ref: (1, 1) float32 SMEM scalars.  x_ref/o_ref: (tile, 128) VMEM.
    # Pure VPU FMA — no MXU involvement.
    o_ref[...] = (x_ref[...] * w_ref[0, 0] + b_ref[0, 0]).astype(o_ref.dtype)


def linear_forward(x, weight, bias, *, force_pallas=False):
    """Forward of nn.Linear(1, 1): y = x @ W.T + b.

    x: (B, 1); weight: (1, 1) in PyTorch (out, in) layout; bias: (1,).
    """
    B, in_dim = x.shape
    out_dim = weight.shape[0]
    assert in_dim == INPUT_DIM and out_dim == OUTPUT_DIM

    dtype = x.dtype
    itemsize = jnp.dtype(dtype).itemsize

    # ---- small-batch fast path: Pallas launch/DMA setup would dominate ------
    if not force_pallas and B * itemsize < _PALLAS_MIN_BYTES:
        y = x * weight[0, 0] + bias[0]        # params stay float32
        return y.astype(dtype)

    # ---- layout plumbing: (B, 1) column -> lane-dense (rows, 128) slab ------
    rows = pl.cdiv(B, _LANES)                 # pad only to the next 128 lanes
    total = rows * _LANES                     # <= B + 127

    if rows <= _MAX_TILE_ROWS:
        tile_rows = rows                      # single block == full array dims
        grid = 1
    else:
        tile_rows = _MAX_TILE_ROWS            # multiple of 8/16 sublanes
        grid = pl.cdiv(rows, tile_rows)       # Pallas absorbs the ragged tail

    flat = x.reshape(-1)
    if total == B:                            # B % 128 == 0: no pad, no slice
        x_slab = flat.reshape(rows, _LANES)
    else:
        x_slab = jnp.pad(flat, (0, total - B)).reshape(rows, _LANES)

    # float32 scalars in SMEM (scalar path is 32-bit anyway; keeps precision
    # even for bf16 activations).
    w_smem = weight.reshape(1, 1).astype(jnp.float32)
    b_smem = bias.reshape(1, 1).astype(jnp.float32)

    cost = pl.CostEstimate(
        flops=2 * total,                       # one mul + one add per element
        bytes_accessed=2 * total * itemsize,   # read slab + write slab
        transcendentals=0,
    )

    def _call(semantics):
        return pl.pallas_call(
            _affine_kernel,
            out_shape=jax.ShapeDtypeStruct((rows, _LANES), dtype),
            grid=(grid,),
            in_specs=[
                pl.BlockSpec(memory_space=pltpu.MemorySpace.SMEM),    # weight
                pl.BlockSpec(memory_space=pltpu.MemorySpace.SMEM),    # bias
                pl.BlockSpec((tile_rows, _LANES), lambda i: (i, 0)),  # x slab
            ],
            out_specs=pl.BlockSpec((tile_rows, _LANES), lambda i: (i, 0)),
            input_output_aliases={2: 0},       # reuse the temporary slab buffer
            cost_estimate=cost,
            compiler_params=pltpu.CompilerParams(
                dimension_semantics=(semantics,),
            ),
        )(w_smem, b_smem, x_slab)

    if _IS_V7X and grid > 1:
        # v7x has 2 TensorCores; CORE_PARALLEL actually shards the grid axis.
        try:
            out_slab = _call(pltpu.CORE_PARALLEL)
        except Exception:
            out_slab = _call(pltpu.PARALLEL)
    else:
        out_slab = _call(pltpu.PARALLEL)

    # Undo the lane packing: back to (B, out_dim).
    if total == B:
        return out_slab.reshape(B, out_dim)
    return out_slab.reshape(-1)[:B].reshape(B, out_dim)


if __name__ == "__main__":
    key = jax.random.PRNGKey(0)
    kx1, kx2, kx3, kw, kb = jax.random.split(key, 5)

    # PyTorch default init for nn.Linear: U(-1/sqrt(in_dim), 1/sqrt(in_dim)).
    bound = 1.0 / (INPUT_DIM ** 0.5)
    weight = jax.random.uniform(
        kw, (OUTPUT_DIM, INPUT_DIM), jnp.float32, minval=-bound, maxval=bound)
    bias = jax.random.uniform(
        kb, (OUTPUT_DIM,), jnp.float32, minval=-bound, maxval=bound)

    def ref_fn(xv):
        return xv @ weight.T + bias

    # 1) Tiny batch (8, 1): takes the small-batch fast path (no Pallas launch).
    x_small = jax.random.normal(kx1, (8, INPUT_DIM), jnp.float32)
    y_small = jax.block_until_ready(linear_forward(x_small, weight, bias))
    assert y_small.shape == (8, OUTPUT_DIM)
    assert jnp.allclose(y_small, ref_fn(x_small), atol=1e-5, rtol=1e-5)

    # 2) Non-multiple-of-128 batch with Pallas forced: exercises the <=127
    #    element pad + tail-slice path of the kernel wrapper.
    x_ragged = jax.random.normal(kx2, (1000, INPUT_DIM), jnp.float32)
    y_ragged = jax.block_until_ready(
        linear_forward(x_ragged, weight, bias, force_pallas=True))
    assert y_ragged.shape == (1000, OUTPUT_DIM)
    assert jnp.allclose(y_ragged, ref_fn(x_ragged), atol=1e-5, rtol=1e-5)

    # 3) Lane-aligned batch (B % 128 == 0) with Pallas forced: exercises the
    #    pad-free / slice-free path (pure reshapes around the kernel).
    x_aligned = jax.random.normal(kx3, (2560, INPUT_DIM), jnp.float32)
    y_aligned = jax.block_until_ready(
        linear_forward(x_aligned, weight, bias, force_pallas=True))
    assert y_aligned.shape == (2560, OUTPUT_DIM)
    assert jnp.allclose(y_aligned, ref_fn(x_aligned), atol=1e-5, rtol=1e-5)

    print("KERNEL_OK")
</pallas_src>

<mosaic_0001>
module attributes {stable_mosaic.version = 11 : i64} {
  func.func @_affine_kernel(%arg0: i32, %arg1: memref<1x1xf32, #tpu.memory_space<smem>>, %arg2: memref<1x1xf32, #tpu.memory_space<smem>>, %arg3: memref<8x128xf32, #tpu.memory_space<vmem>>, %arg4: memref<8x128xf32, #tpu.memory_space<vmem>>) attributes {dimension_semantics = [#tpu.dimension_semantics<parallel>], iteration_bounds = array<i64: 1>, scalar_prefetch = 0 : i64, scratch_operands = 0 : i64, tpu.core_type = #tpu.core_type<tc>, window_params = [{transform_indices = @transform_0, window_bounds = array<i64: 1, 1>}, {transform_indices = @transform_1, window_bounds = array<i64: 1, 1>}, {transform_indices = @transform_2, window_bounds = array<i64: 8, 128>}, {transform_indices = @transform_3, window_bounds = array<i64: 8, 128>}]} {
    %c0 = arith.constant 0 : index
    %c0_0 = arith.constant 0 : index
    %0 = vector.load %arg3[%c0, %c0_0] : memref<8x128xf32, #tpu.memory_space<vmem>>, vector<8x128xf32>
    %c0_1 = arith.constant 0 : index
    %c0_2 = arith.constant 0 : index
    %1 = memref.load %arg1[%c0_1, %c0_2] : memref<1x1xf32, #tpu.memory_space<smem>>
    %2 = vector.broadcast %1 : f32 to vector<8x128xf32>
    %3 = arith.mulf %0, %2 : vector<8x128xf32>
    %c0_3 = arith.constant 0 : index
    %c0_4 = arith.constant 0 : index
    %4 = memref.load %arg2[%c0_3, %c0_4] : memref<1x1xf32, #tpu.memory_space<smem>>
    %5 = vector.broadcast %4 : f32 to vector<8x128xf32>
    %6 = arith.addf %3, %5 : vector<8x128xf32>
    %c0_5 = arith.constant 0 : index
    %c0_6 = arith.constant 0 : index
    %7 = vector.load %arg4[%c0_5, %c0_6] : memref<8x128xf32, #tpu.memory_space<vmem>>, vector<8x128xf32>
    tpu.vector_store %arg4[%c0_5, %c0_6], %6 {strides = array<i32>} : memref<8x128xf32, #tpu.memory_space<vmem>>, vector<8x128xf32>,
    return
  }
  func.func @transform_0(%arg0: i32) -> (i32, i32) {
    %c0_i32 = arith.constant 0 : i32
    %c0_i32_0 = arith.constant 0 : i32
    %c0_i32_1 = arith.constant 0 : i32
    return %c0_i32, %c0_i32_0 : i32, i32
  }
  func.func @transform_1(%arg0: i32) -> (i32, i32) {
    %c0_i32 = arith.constant 0 : i32
    %c0_i32_0 = arith.constant 0 : i32
    %c0_i32_1 = arith.constant 0 : i32
    return %c0_i32, %c0_i32_0 : i32, i32
  }
  func.func @transform_2(%arg0: i32) -> (i32, i32) {
    %c0_i32 = arith.constant 0 : i32
    %c0_i32_0 = arith.constant 0 : i32
    return %arg0, %c0_i32 : i32, i32
  }
  func.func @transform_3(%arg0: i32) -> (i32, i32) {
    %c0_i32 = arith.constant 0 : i32
    %c0_i32_0 = arith.constant 0 : i32
    return %arg0, %c0_i32 : i32, i32
  }
}

</mosaic_0001>

<bundles_post_ra>
// kernel: tpu_custom_call.1
= control target key start
LH: loop header
LB: loop body
LE: loop exit
PB: predicated region body
PF: predicated region fallthrough
CT: control target
= control target key end

     0   :  { %10 = vsyncpa [#allocation5], 0  ;;  %s132_s0 = inlined_call_operand.<no memory space> [shape: f32[1,1], index: 0, kind: input, shape index: {}]   ;;  %s133_s1 = inlined_call_operand.<no memory space> [shape: f32[1,1], index: 1, kind: input, shape index: {}]   ;;  %s134_s2 = inlined_call_operand.hbm [shape: f32[8,128], index: 2, kind: input, shape index: {}, may-alias: {2,3}]   ;;  %s135_s3 = inlined_call_operand.hbm [shape: f32[8,128], index: 3, kind: output, shape index: {}, may-alias: {2,3}]  }
   0x1   :  { %11 = vsyncpa [#allocation6], 0  ;;  %s98_s12 = smov [#allocation4]  }
   0x2   :  { %s22_s13 = sshll.u32 %s98_s12, 4  ;;  %s23_s13 = int_to_ptr.vmem [resolvable:$true] %s22_s13 }
   0x3   :  { %s62_s14 = scalar_lea.vmem %s23_s13, 128  ;;  %p67_p1 = scmp.lt.s32.totalorder %s23_s13, %s23_s13 }
   0x4   :  { %p63_p0 = scmp.ne.s32.totalorder %s23_s13, %s62_s14  ;;  %p68_p2 = scmp.lt.s32.totalorder %s62_s14, %s62_s14 }
   0x6   :  { %p69_p3 = por %p68_p2, %p67_p1 }
   0x8   :  { %p70_p4 = pnand %p69_p3, %p63_p0 }
   0xa   :  { %73 = shalt.err (!%p70_p4)
}
   0xb   :  { %25 = dma.hbm_to_vmem [thread:$0]  %s134_s2, 128, %s23_s13, [#allocation5]  }
   0xc   :  { %94 = dma.done.wait [#allocation5], 128  }
   0xd   :  { %95 = vsyncadd [#allocation5], 4294967168  ;;  %v31_v0 = vstv %s132_s0  ;;  %v29_v1 = vld [vmem:[#allocation4] sm:$0xff]  ;;  %v34_v2 = vstv %s133_s1  ;;  %s99_s21 = smov [#allocation7]  }
   0xe   :  { %s43_s22 = sshll.u32 %s99_s21, 4  ;;  %v32_v3 = vmul.f32 %v31_v0, %v29_v1  ;;  %s44_s22 = int_to_ptr.vmem [resolvable:$true] %s43_s22 }
   0xf   :  { %s74_s23 = scalar_lea.vmem %s44_s22, 128  ;;  %p79_p6 = scmp.lt.s32.totalorder %s44_s22, %s44_s22 }
  0x10   :  { %v35_v4 = vadd.f32 %v34_v2, %v32_v3  ;;  %p75_p5 = scmp.ne.s32.totalorder %s44_s22, %s74_s23  ;;  %p80_p7 = scmp.lt.s32.totalorder %s74_s23, %s74_s23 }
  0x12   :  { %36 = vst [vmem:[#allocation7] sm:$0xff] %v35_v4  ;;  %p81_p8 = por %p80_p7, %p79_p6 }
  0x14   :  { %p82_p9 = pnand %p81_p8, %p75_p5 }
  0x16   :  { %85 = shalt.err (!%p82_p9)
}
  0x17   :  { %46 = dma.vmem_to_hbm [thread:$0]  %s44_s22, 128, %s135_s3, [#allocation6]  }
  0x18   :  { %96 = dma.done.wait [#allocation6], 128  }
  0x19   :  { %97 = vsyncadd [#allocation6], 4294967168 }
  0x1a   :  { %50 = vsyncpa [#allocation5], 1 }
  0x1b   :  { %51 = vsyncpa [#allocation6], 1 }

</bundles_post_ra>
